<compile_context>
chip_gen: v7x
topology: tpu7x:2x2x1
jax: 0.10.0
libtpu: 0.0.40
codegen_flags: <defaults>
</compile_context>

<pallas_src>
import functools

import jax
import jax.numpy as jnp
from jax.experimental import pallas as pl
from jax.experimental.pallas import tpu as pltpu


def _round_up(a, b):
    return (a + b - 1) // b * b


# ---------------------------------------------------------------------------
# Fused kernel: phase 0 = conv matmul + BN stats (conv result kept in VMEM),
#               phase 1 = normalize + affine + activation.
# ---------------------------------------------------------------------------
def _fused_kernel(p_ref, w_ref, g_ref, bt_ref, o_ref,
                  y_vmem, sum_vmem, ssq_vmem, scale_vmem, shift_vmem,
                  *, tm, inv_count, eps, sigmoid):
    phase = pl.program_id(0)
    i = pl.program_id(1)
    n_i = pl.num_programs(1)
    off = pl.multiple_of(i * tm, 128)

    @pl.when(phase == 0)
    def _():
        @pl.when(i == 0)
        def _():
            sum_vmem[...] = jnp.zeros_like(sum_vmem)
            ssq_vmem[...] = jnp.zeros_like(ssq_vmem)

        # (Cp, K) @ (K, tm) -> (Cp, tm); lane axis = tm (lane-dense).
        y = jnp.dot(w_ref[...], p_ref[...], preferred_element_type=jnp.float32)
        y_vmem[:, pl.ds(off, tm)] = y
        sum_vmem[...] += jnp.sum(y, axis=1, keepdims=True)
        ssq_vmem[...] += jnp.sum(y * y, axis=1, keepdims=True)

        # Fold BN statistics into per-channel scale/shift on the last stats step.
        @pl.when(i == n_i - 1)
        def _():
            mean = sum_vmem[...] * inv_count
            var = ssq_vmem[...] * inv_count - mean * mean   # biased variance (PyTorch BN)
            scale = g_ref[...] * jax.lax.rsqrt(var + eps)
            scale_vmem[...] = scale
            shift_vmem[...] = bt_ref[...] - mean * scale

    @pl.when(phase == 1)
    def _():
        z = y_vmem[:, pl.ds(off, tm)] * scale_vmem[...] + shift_vmem[...]
        if sigmoid:
            o_ref[...] = jax.nn.sigmoid(z)
        else:
            o_ref[...] = jnp.maximum(z, 0.0)


# ---------------------------------------------------------------------------
# Fallback kernels (conv result too big to keep resident in VMEM):
#   kernel 1: conv matmul + per-core partial BN stats (parallel axis -> v7x megacore)
#   kernel 2: normalize + affine + activation
# ---------------------------------------------------------------------------
def _conv_stats_kernel(p_ref, w_ref, y_ref, stat_ref, *, cp):
    i = pl.program_id(1)
    y = jnp.dot(w_ref[...], p_ref[...], preferred_element_type=jnp.float32)
    y_ref[...] = y

    @pl.when(i == 0)
    def _():
        stat_ref[...] = jnp.zeros_like(stat_ref)

    stat_ref[0:cp, :] += jnp.sum(y, axis=1, keepdims=True)
    stat_ref[cp:, :] += jnp.sum(y * y, axis=1, keepdims=True)


def _bn_act_kernel(y_ref, scale_ref, shift_ref, o_ref, *, sigmoid):
    z = y_ref[...] * scale_ref[...] + shift_ref[...]
    if sigmoid:
        o_ref[...] = jax.nn.sigmoid(z)
    else:
        o_ref[...] = jnp.maximum(z, 0.0)


def patch_conv_forward(x, w, b, gamma, beta, *, stride=2, last_layer=False,
                       eps=1e-5, tm_max=512, fuse=None):
    """Forward pass of Patch_Conv.  x: (N, C_in, H, W) float32, NCHW."""
    # Conv bias is mathematically cancelled by training-mode BatchNorm (mean absorbs it,
    # variance is unchanged), so it is intentionally unused.
    del b
    N, C_in, H, W = x.shape
    C_out, _, KH, KW = w.shape
    pad = 1
    Ho = (H + 2 * pad - KH) // stride + 1
    Wo = (W + 2 * pad - KW) // stride + 1
    M = N * Ho * Wo
    K = C_in * KH * KW
    Cp = _round_up(C_out, 8)          # pad channels to a sublane multiple

    # ---- glue: transposed im2col, (K, M) with M (lane axis) contiguous ----
    xt = jnp.transpose(x.astype(jnp.float32), (1, 0, 2, 3))          # (C_in, N, H, W)
    xp = jnp.pad(xt, ((0, 0), (0, 0), (pad, pad), (pad, pad)))
    cols = []
    for kh in range(KH):
        for kw in range(KW):
            cols.append(xp[:, :, kh:kh + stride * Ho:stride,
                                 kw:kw + stride * Wo:stride])         # (C_in, N, Ho, Wo)
    pt = jnp.stack(cols, axis=1).reshape(K, M)                        # rows ordered (ci, kh, kw)

    w2 = jnp.pad(w.reshape(C_out, K).astype(jnp.float32),
                 ((0, Cp - C_out), (0, 0)))                           # (Cp, K), no transpose needed
    g2 = jnp.pad(gamma.astype(jnp.float32), (0, Cp - C_out)).reshape(Cp, 1)
    bt2 = jnp.pad(beta.astype(jnp.float32), (0, Cp - C_out)).reshape(Cp, 1)

    # ---- tile selection (big lane-dense tiles, bounded by a VMEM budget) ----
    tm = min(tm_max, _round_up(M, 128))
    while tm > 128 and 8 * K * tm > (16 << 20):      # double-buffered patches tile <= 16 MiB
        tm -= 128

    mpad_fused = _round_up(M, tm)
    if fuse is None:
        # Keep the conv result resident in VMEM (no HBM round trip) whenever it fits.
        fuse = Cp * mpad_fused * 4 <= (8 << 20)

    if fuse:
        Mpad = mpad_fused
        Mt = Mpad // tm
        ptp = jnp.pad(pt, ((0, 0), (0, Mpad - M)))    # zero columns -> zero contribution to stats
        est = 4 * (2 * K * tm + Cp * K + 2 * Cp * tm + Cp * Mpad) + (1 << 20)
        vmem_limit = int(min(48 << 20, max(2 * est, 32 << 20)))

        kern = functools.partial(_fused_kernel, tm=tm, inv_count=float(1.0 / M),
                                 eps=float(eps), sigmoid=bool(last_layer))
        out_pad = pl.pallas_call(
            kern,
            out_shape=jax.ShapeDtypeStruct((Cp, Mpad), jnp.float32),
            grid_spec=pltpu.PrefetchScalarGridSpec(
                num_scalar_prefetch=0,
                grid=(2, Mt),
                in_specs=[
                    # Patches are only streamed during phase 0 (index pinned in phase 1).
                    pl.BlockSpec((K, tm), lambda p, i: (0, i * (1 - p))),
                    pl.BlockSpec((Cp, K), lambda p, i: (0, 0)),
                    pl.BlockSpec((Cp, 1), lambda p, i: (0, 0)),
                    pl.BlockSpec((Cp, 1), lambda p, i: (0, 0)),
                ],
                out_specs=pl.BlockSpec((Cp, tm), lambda p, i: (0, i * p)),
                scratch_shapes=[pltpu.VMEM((Cp, Mpad), jnp.float32),  # resident conv result
                                pltpu.VMEM((Cp, 1), jnp.float32),     # sum
                                pltpu.VMEM((Cp, 1), jnp.float32),     # sum of squares
                                pltpu.VMEM((Cp, 1), jnp.float32),     # scale
                                pltpu.VMEM((Cp, 1), jnp.float32)]),   # shift
            compiler_params=pltpu.CompilerParams(
                dimension_semantics=("arbitrary", "arbitrary"),
                vmem_limit_bytes=vmem_limit),
        )(ptp, w2, g2, bt2)
    else:
        NCORE = 2
        Mpad = _round_up(M, NCORE * tm)
        Mt = Mpad // tm
        mt_half = Mt // NCORE
        ptp = jnp.pad(pt, ((0, 0), (0, Mpad - M)))
        est = 4 * (2 * K * tm + Cp * K + 4 * Cp * tm) + (1 << 20)
        vmem_limit = int(min(48 << 20, max(2 * est, 32 << 20)))

        # Kernel 1: conv matmul + per-core partial BN statistics (both TCs on v7x).
        y_pad, stats = pl.pallas_call(
            functools.partial(_conv_stats_kernel, cp=Cp),
            out_shape=(jax.ShapeDtypeStruct((Cp, Mpad), jnp.float32),
                       jax.ShapeDtypeStruct((NCORE * 2 * Cp, 1), jnp.float32)),
            grid_spec=pltpu.PrefetchScalarGridSpec(
                num_scalar_prefetch=0,
                grid=(NCORE, mt_half),
                in_specs=[pl.BlockSpec((K, tm), lambda c, i: (0, c * mt_half + i)),
                          pl.BlockSpec((Cp, K), lambda c, i: (0, 0))],
                out_specs=[pl.BlockSpec((Cp, tm), lambda c, i: (0, c * mt_half + i)),
                           pl.BlockSpec((2 * Cp, 1), lambda c, i: (c, 0))]),
            compiler_params=pltpu.CompilerParams(
                dimension_semantics=("parallel", "arbitrary"),
                vmem_limit_bytes=vmem_limit),
        )(ptp, w2)

        # Combine per-core partial sums and fold into scale/shift (tiny host-side math).
        st = stats.reshape(NCORE, 2, Cp)
        ch_sum = jnp.sum(st[:, 0, :], axis=0).reshape(Cp, 1)
        ch_ssq = jnp.sum(st[:, 1, :], axis=0).reshape(Cp, 1)
        mean = ch_sum / jnp.float32(M)
        var = ch_ssq / jnp.float32(M) - mean * mean
        scale = g2 * jax.lax.rsqrt(var + jnp.float32(eps))
        shift = bt2 - mean * scale

        # Kernel 2: lane-dense normalize + affine + activation.
        out_pad = pl.pallas_call(
            functools.partial(_bn_act_kernel, sigmoid=bool(last_layer)),
            out_shape=jax.ShapeDtypeStruct((Cp, Mpad), jnp.float32),
            grid_spec=pltpu.PrefetchScalarGridSpec(
                num_scalar_prefetch=0,
                grid=(Mt,),
                in_specs=[pl.BlockSpec((Cp, tm), lambda i: (0, i)),
                          pl.BlockSpec((Cp, 1), lambda i: (0, 0)),
                          pl.BlockSpec((Cp, 1), lambda i: (0, 0))],
                out_specs=pl.BlockSpec((Cp, tm), lambda i: (0, i))),
            compiler_params=pltpu.CompilerParams(
                dimension_semantics=("parallel",),
                vmem_limit_bytes=vmem_limit),
        )(y_pad, scale, shift)

    # Back to NCHW: only the two leading axes swap; minor spatial dims stay contiguous.
    out = out_pad[:C_out, :M].reshape(C_out, N, Ho, Wo)
    return jnp.transpose(out, (1, 0, 2, 3))


def _reference(x, w, b, gamma, beta, *, stride=2, last_layer=False, eps=1e-5):
    """Pure-JAX reference for the PyTorch forward (training-mode BN, conv bias kept)."""
    y = jax.lax.conv_general_dilated(
        x, w, (stride, stride), ((1, 1), (1, 1)),
        dimension_numbers=('NCHW', 'OIHW', 'NCHW'))
    y = y + b[None, :, None, None]
    mean = y.mean(axis=(0, 2, 3), keepdims=True)
    var = y.var(axis=(0, 2, 3), keepdims=True)  # biased
    yn = (y - mean) / jnp.sqrt(var + eps)
    yn = yn * gamma[None, :, None, None] + beta[None, :, None, None]
    return jax.nn.sigmoid(yn) if last_layer else jnp.maximum(yn, 0.0)


if __name__ == "__main__":
    key = jax.random.PRNGKey(0)
    configs = [
        dict(N=2, C_in=4, H=16, W=16, C_out=8),
        dict(N=2, C_in=3, H=8, W=8, C_out=6),   # exercises channel/M padding paths
    ]
    for cfg in configs:
        k1, k2, k3, k4, k5, key = jax.random.split(key, 6)
        x = jax.random.normal(k1, (cfg["N"], cfg["C_in"], cfg["H"], cfg["W"]), jnp.float32)
        w = 0.1 * jax.random.normal(k2, (cfg["C_out"], cfg["C_in"], 4, 4), jnp.float32)
        b = 0.1 * jax.random.normal(k3, (cfg["C_out"],), jnp.float32)
        gamma = 1.0 + 0.1 * jax.random.normal(k4, (cfg["C_out"],), jnp.float32)
        beta = 0.1 * jax.random.normal(k5, (cfg["C_out"],), jnp.float32)
        ref_shape = (cfg["N"], cfg["C_out"], cfg["H"] // 2, cfg["W"] // 2)
        for last_layer in (False, True):
            ref = _reference(x, w, b, gamma, beta, last_layer=last_layer)
            for fuse in (True, False):   # exercise both the fused and the two-kernel paths
                out = patch_conv_forward(x, w, b, gamma, beta,
                                         last_layer=last_layer, fuse=fuse)
                out = jax.block_until_ready(out)
                assert out.shape == ref_shape, (out.shape, ref_shape)
                err = float(jnp.max(jnp.abs(out - ref)))
                assert jnp.allclose(out, ref, atol=2e-4, rtol=2e-4), err
    print("KERNEL_OK")
</pallas_src>

<mosaic_0001>
module attributes {stable_mosaic.version = 11 : i64} {
  func.func @_fused_kernel(%arg0: i32, %arg1: i32, %arg2: memref<64x128xf32, #tpu.memory_space<vmem>>, %arg3: memref<8x64xf32, #tpu.memory_space<vmem>>, %arg4: memref<8x1xf32, #tpu.memory_space<vmem>>, %arg5: memref<8x1xf32, #tpu.memory_space<vmem>>, %arg6: memref<8x128xf32, #tpu.memory_space<vmem>>, %arg7: memref<8x128xf32, #tpu.memory_space<vmem>>, %arg8: memref<8x1xf32, #tpu.memory_space<vmem>>, %arg9: memref<8x1xf32, #tpu.memory_space<vmem>>, %arg10: memref<8x1xf32, #tpu.memory_space<vmem>>, %arg11: memref<8x1xf32, #tpu.memory_space<vmem>>) attributes {dimension_semantics = [#tpu.dimension_semantics<arbitrary>, #tpu.dimension_semantics<arbitrary>], iteration_bounds = array<i64: 2, 1>, scalar_prefetch = 0 : i64, scratch_operands = 5 : i64, tpu.core_type = #tpu.core_type<tc>, window_params = [{transform_indices = @transform_0, window_bounds = array<i64: 64, 128>}, {pipeline_mode = #tpu.pipeline_mode<synchronous>, transform_indices = @transform_1, window_bounds = array<i64: 8, 64>}, {pipeline_mode = #tpu.pipeline_mode<synchronous>, transform_indices = @transform_2, window_bounds = array<i64: 8, 1>}, {pipeline_mode = #tpu.pipeline_mode<synchronous>, transform_indices = @transform_3, window_bounds = array<i64: 8, 1>}, {transform_indices = @transform_4, window_bounds = array<i64: 8, 128>}]} {
    %c128_i32 = arith.constant 128 : i32
    %0 = arith.muli %arg1, %c128_i32 : i32
    %1 = tpu.assume_multiple %0, 128 : i32
    %c0_i32 = arith.constant 0 : i32
    %2 = arith.cmpi eq, %arg0, %c0_i32 : i32
    %3 = arith.extui %2 : i1 to i32
    %c0_i32_0 = arith.constant 0 : i32
    %4 = arith.cmpi ne, %3, %c0_i32_0 : i32
    scf.if %4 {
      %c0_i32_2 = arith.constant 0 : i32
      %8 = arith.cmpi eq, %arg1, %c0_i32_2 : i32
      %9 = arith.extui %8 : i1 to i32
      %c0_i32_3 = arith.constant 0 : i32
      %10 = arith.cmpi ne, %9, %c0_i32_3 : i32
      scf.if %10 {
        %cst_20 = arith.constant 0.000000e+00 : f32
        %30 = vector.broadcast %cst_20 : f32 to vector<8x1xf32>
        %c0_21 = arith.constant 0 : index
        %c0_22 = arith.constant 0 : index
        %31 = vector.load %arg8[%c0_21, %c0_22] : memref<8x1xf32, #tpu.memory_space<vmem>>, vector<8x1xf32>
        tpu.vector_store %arg8[%c0_21, %c0_22], %30 {strides = array<i32>} : memref<8x1xf32, #tpu.memory_space<vmem>>, vector<8x1xf32>,
        %cst_23 = arith.constant 0.000000e+00 : f32
        %32 = vector.broadcast %cst_23 : f32 to vector<8x1xf32>
        %c0_24 = arith.constant 0 : index
        %c0_25 = arith.constant 0 : index
        %33 = vector.load %arg9[%c0_24, %c0_25] : memref<8x1xf32, #tpu.memory_space<vmem>>, vector<8x1xf32>
        tpu.vector_store %arg9[%c0_24, %c0_25], %32 {strides = array<i32>} : memref<8x1xf32, #tpu.memory_space<vmem>>, vector<8x1xf32>,
      } else {
      }
      %c0 = arith.constant 0 : index
      %c0_4 = arith.constant 0 : index
      %11 = vector.load %arg3[%c0, %c0_4] : memref<8x64xf32, #tpu.memory_space<vmem>>, vector<8x64xf32>
      %c0_5 = arith.constant 0 : index
      %c0_6 = arith.constant 0 : index
      %12 = vector.load %arg2[%c0_5, %c0_6] : memref<64x128xf32, #tpu.memory_space<vmem>>, vector<64x128xf32>
      %cst = arith.constant dense<0.000000e+00> : vector<8x128xf32>
      %13 = tpu.matmul %11, %12, %cst {dimension_numbers = #tpu.dot_dimension_numbers<[1], [0], [0], [1], [0, 0, 1, 1], [], []>} : vector<8x64xf32>, vector<64x128xf32>, vector<8x128xf32> -> vector<8x128xf32>
      %c0_7 = arith.constant 0 : index
      %14 = arith.index_cast %1 : i32 to index
      %15 = vector.load %arg7[%c0_7, %14] : memref<8x128xf32, #tpu.memory_space<vmem>>, vector<8x128xf32>
      tpu.vector_store %arg7[%c0_7, %14], %13 {strides = array<i32>} : memref<8x128xf32, #tpu.memory_space<vmem>>, vector<8x128xf32>,
      %c0_8 = arith.constant 0 : index
      %c0_9 = arith.constant 0 : index
      %16 = vector.load %arg8[%c0_8, %c0_9] : memref<8x1xf32, #tpu.memory_space<vmem>>, vector<8x1xf32>
      %cst_10 = arith.constant dense<0.000000e+00> : vector<8xf32>
      %17 = vector.multi_reduction <add>, %13, %cst_10 [1] : vector<8x128xf32> to vector<8xf32>
      %18 = vector.shape_cast %17 : vector<8xf32> to vector<8x1xf32>
      %19 = arith.addf %16, %18 : vector<8x1xf32>
      %c0_11 = arith.constant 0 : index
      %c0_12 = arith.constant 0 : index
      %20 = vector.load %arg8[%c0_11, %c0_12] : memref<8x1xf32, #tpu.memory_space<vmem>>, vector<8x1xf32>
      tpu.vector_store %arg8[%c0_11, %c0_12], %19 {strides = array<i32>} : memref<8x1xf32, #tpu.memory_space<vmem>>, vector<8x1xf32>,
      %c0_13 = arith.constant 0 : index
      %c0_14 = arith.constant 0 : index
      %21 = vector.load %arg9[%c0_13, %c0_14] : memref<8x1xf32, #tpu.memory_space<vmem>>, vector<8x1xf32>
      %22 = arith.mulf %13, %13 : vector<8x128xf32>
      %cst_15 = arith.constant dense<0.000000e+00> : vector<8xf32>
      %23 = vector.multi_reduction <add>, %22, %cst_15 [1] : vector<8x128xf32> to vector<8xf32>
      %24 = vector.shape_cast %23 : vector<8xf32> to vector<8x1xf32>
      %25 = arith.addf %21, %24 : vector<8x1xf32>
      %c0_16 = arith.constant 0 : index
      %c0_17 = arith.constant 0 : index
      %26 = vector.load %arg9[%c0_16, %c0_17] : memref<8x1xf32, #tpu.memory_space<vmem>>, vector<8x1xf32>
      tpu.vector_store %arg9[%c0_16, %c0_17], %25 {strides = array<i32>} : memref<8x1xf32, #tpu.memory_space<vmem>>, vector<8x1xf32>,
      %c0_i32_18 = arith.constant 0 : i32
      %27 = arith.cmpi eq, %arg1, %c0_i32_18 : i32
      %28 = arith.extui %27 : i1 to i32
      %c0_i32_19 = arith.constant 0 : i32
      %29 = arith.cmpi ne, %28, %c0_i32_19 : i32
      scf.if %29 {
        %c0_20 = arith.constant 0 : index
        %c0_21 = arith.constant 0 : index
        %30 = vector.load %arg8[%c0_20, %c0_21] : memref<8x1xf32, #tpu.memory_space<vmem>>, vector<8x1xf32>
        %cst_22 = arith.constant 7.812500e-03 : f32
        %31 = vector.broadcast %cst_22 : f32 to vector<8x1xf32>
        %32 = arith.mulf %30, %31 : vector<8x1xf32>
        %c0_23 = arith.constant 0 : index
        %c0_24 = arith.constant 0 : index
        %33 = vector.load %arg9[%c0_23, %c0_24] : memref<8x1xf32, #tpu.memory_space<vmem>>, vector<8x1xf32>
        %cst_25 = arith.constant 7.812500e-03 : f32
        %34 = vector.broadcast %cst_25 : f32 to vector<8x1xf32>
        %35 = arith.mulf %33, %34 : vector<8x1xf32>
        %36 = arith.mulf %32, %32 : vector<8x1xf32>
        %37 = arith.subf %35, %36 : vector<8x1xf32>
        %c0_26 = arith.constant 0 : index
        %c0_27 = arith.constant 0 : index
        %38 = vector.load %arg4[%c0_26, %c0_27] : memref<8x1xf32, #tpu.memory_space<vmem>>, vector<8x1xf32>
        %cst_28 = arith.constant 9.99999974E-6 : f32
        %39 = vector.broadcast %cst_28 : f32 to vector<8x1xf32>
        %40 = arith.addf %37, %39 : vector<8x1xf32>
        %41 = math.rsqrt %40 : vector<8x1xf32>
        %42 = arith.mulf %38, %41 : vector<8x1xf32>
        %c0_29 = arith.constant 0 : index
        %c0_30 = arith.constant 0 : index
        %43 = vector.load %arg10[%c0_29, %c0_30] : memref<8x1xf32, #tpu.memory_space<vmem>>, vector<8x1xf32>
        tpu.vector_store %arg10[%c0_29, %c0_30], %42 {strides = array<i32>} : memref<8x1xf32, #tpu.memory_space<vmem>>, vector<8x1xf32>,
        %c0_31 = arith.constant 0 : index
        %c0_32 = arith.constant 0 : index
        %44 = vector.load %arg5[%c0_31, %c0_32] : memref<8x1xf32, #tpu.memory_space<vmem>>, vector<8x1xf32>
        %45 = arith.mulf %32, %42 : vector<8x1xf32>
        %46 = arith.subf %44, %45 : vector<8x1xf32>
        %c0_33 = arith.constant 0 : index
        %c0_34 = arith.constant 0 : index
        %47 = vector.load %arg11[%c0_33, %c0_34] : memref<8x1xf32, #tpu.memory_space<vmem>>, vector<8x1xf32>
        tpu.vector_store %arg11[%c0_33, %c0_34], %46 {strides = array<i32>} : memref<8x1xf32, #tpu.memory_space<vmem>>, vector<8x1xf32>,
      } else {
      }
    } else {
    }
    %c1_i32 = arith.constant 1 : i32
    %5 = arith.cmpi eq, %arg0, %c1_i32 : i32
    %6 = arith.extui %5 : i1 to i32
    %c0_i32_1 = arith.constant 0 : i32
    %7 = arith.cmpi ne, %6, %c0_i32_1 : i32
    scf.if %7 {
      %c0 = arith.constant 0 : index
      %8 = arith.index_cast %1 : i32 to index
      %9 = vector.load %arg7[%c0, %8] : memref<8x128xf32, #tpu.memory_space<vmem>>, vector<8x128xf32>
      %c0_2 = arith.constant 0 : index
      %c0_3 = arith.constant 0 : index
      %10 = vector.load %arg10[%c0_2, %c0_3] : memref<8x1xf32, #tpu.memory_space<vmem>>, vector<8x1xf32>
      %11 = vector.broadcast %10 : vector<8x1xf32> to vector<8x128xf32>
      %12 = arith.mulf %9, %11 : vector<8x128xf32>
      %c0_4 = arith.constant 0 : index
      %c0_5 = arith.constant 0 : index
      %13 = vector.load %arg11[%c0_4, %c0_5] : memref<8x1xf32, #tpu.memory_space<vmem>>, vector<8x1xf32>
      %14 = vector.broadcast %13 : vector<8x1xf32> to vector<8x128xf32>
      %15 = arith.addf %12, %14 : vector<8x128xf32>
      %cst = arith.constant 0.000000e+00 : f32
      %16 = vector.broadcast %cst : f32 to vector<8x128xf32>
      %17 = arith.maximumf %15, %16 : vector<8x128xf32>
      %c0_6 = arith.constant 0 : index
      %c0_7 = arith.constant 0 : index
      %18 = vector.load %arg6[%c0_6, %c0_7] : memref<8x128xf32, #tpu.memory_space<vmem>>, vector<8x128xf32>
      tpu.vector_store %arg6[%c0_6, %c0_7], %17 {strides = array<i32>} : memref<8x128xf32, #tpu.memory_space<vmem>>, vector<8x128xf32>,
    } else {
    }
    return
  }
  func.func @transform_0(%arg0: i32, %arg1: i32) -> (i32, i32) {
    %c1_i32 = arith.constant 1 : i32
    %0 = arith.subi %c1_i32, %arg0 : i32
    %1 = arith.muli %arg1, %0 : i32
    %c0_i32 = arith.constant 0 : i32
    %c0_i32_0 = arith.constant 0 : i32
    return %c0_i32, %1 : i32, i32
  }
  func.func @transform_1(%arg0: i32, %arg1: i32) -> (i32, i32) {
    %c0_i32 = arith.constant 0 : i32
    %c0_i32_0 = arith.constant 0 : i32
    %c0_i32_1 = arith.constant 0 : i32
    return %c0_i32, %c0_i32_0 : i32, i32
  }
  func.func @transform_2(%arg0: i32, %arg1: i32) -> (i32, i32) {
    %c0_i32 = arith.constant 0 : i32
    %c0_i32_0 = arith.constant 0 : i32
    %c0_i32_1 = arith.constant 0 : i32
    return %c0_i32, %c0_i32_0 : i32, i32
  }
  func.func @transform_3(%arg0: i32, %arg1: i32) -> (i32, i32) {
    %c0_i32 = arith.constant 0 : i32
    %c0_i32_0 = arith.constant 0 : i32
    %c0_i32_1 = arith.constant 0 : i32
    return %c0_i32, %c0_i32_0 : i32, i32
  }
  func.func @transform_4(%arg0: i32, %arg1: i32) -> (i32, i32) {
    %0 = arith.muli %arg1, %arg0 : i32
    %c0_i32 = arith.constant 0 : i32
    %c0_i32_0 = arith.constant 0 : i32
    return %c0_i32, %0 : i32, i32
  }
}

</mosaic_0001>

<bundles_post_ra>
// kernel: tpu_custom_call.1
= control target key start
LH: loop header
LB: loop body
LE: loop exit
PB: predicated region body
PF: predicated region fallthrough
CT: control target
= control target key end

     0   :  { %9 = vsyncpa [#allocation8], 0  ;;  %s819_s0 = inlined_call_operand.hbm [shape: f32[64,128], index: 0, kind: input, shape index: {}]   ;;  %s820_s1 = inlined_call_operand.vmem [shape: f32[8,64], index: 1, kind: input, shape index: {}]   ;;  %s821_s2 = inlined_call_operand.vmem [shape: f32[8,1], index: 2, kind: input, shape index: {}]   ;;  %s822_s3 = inlined_call_operand.vmem [shape: f32[8,1], index: 3, kind: input, shape index: {}]   ;;  %s823_s4 = inlined_call_operand.hbm [shape: f32[8,128], index: 4, kind: output, shape index: {}]  }
   0x1   :  { %11 = vsyncpa [#allocation8 + $0x1], 0 }
   0x2   :  { %12 = vsyncpa [#allocation9], 0 }
   0x3   :  { %14 = vsyncpa [#allocation9 + $0x1], 0  ;;  %s716_s15 = smov 0   ;;  %s718_s16 = smov 0  }
   0x4   :  { %s720_s17 = smov 0  }
   0x5 LB: > { %s486_s18 = sadd.s32 4294967295, %s681_s17   ;;  %s487_s19 = sadd.s32 4294967294, %s681_s17   ;;  %s681_s17 = sphi %s720_s17, %s20_s17   ;;  %s677_s16 = sphi %s718_s16, %s829_s16   ;;  %s673_s15 = sphi %s716_s15, %s828_s15  }
   0x6   : > { %s32_s20 = sadd.s32 1, %s677_s16  ;;  %p556_p2 = scmp.lt.s32.totalorder %s681_s17, 2 }
   0x7   : > { %p34_p1 = scmp.ge.s32.totalorder %s32_s20, 2  ;;  %p557_p3 = scmp.eq.s32.totalorder %s681_s17, 0 }
   0x8   : > { %s683_s22 = smov [#allocation7]   ;;  %s597_s26 = scalar_lea.hbm %s819_s0, 1024 }
   0x9   : > { %s831_s20 = smov (%p34_p1, %s32_s20), 0  ;;  %p739_p4 = pnand %p557_p3, %p556_p2 }
   0xa   : > { %s192_s23 = sshll.u32 %s683_s22, 4  ;;  %p598_p6 = scmp.ne.s32.totalorder %s819_s0, %s597_s26  ;;  %s193_s23 = int_to_ptr.vmem [resolvable:$true] %s192_s23 }
   0xb   : > { %p599_p7 = pneg %p739_p4  ;;  %p604_p10 = scmp.lt.u32.totalorder %s597_s26, %s819_s0 }
   0xd   : > { %p600_p8 = pnand %p599_p7, %p598_p6 }
   0xf   : > { %p601_p9 = pneg %p600_p8 }
  0x11   : > { %p606_p11 = pnand %p604_p10, %p601_p9 }
  0x13   : > { %609 = shalt.err (!%p606_p11)
}
  0x14   : > { %s610_s5 = scalar_lea.vmem %s193_s23, 1024  ;;  %s617_s6 = scalar_lea.vmem %s193_s23, 2048 }
  0x15   : > { %p611_p12 = scmp.ne.s32.totalorder %s193_s23, %s610_s5  ;;  %p618_p2 = scmp.lt.s32.totalorder %s193_s23, %s193_s23 }
  0x16   : > { %p619_p3 = scmp.lt.s32.totalorder %s617_s6, %s610_s5 }
  0x17   : > { %p613_p13 = pnand %p611_p12, %p599_p7 }
  0x18   : > { %p620_p0 = por %p619_p3, %p618_p2 }
  0x19   : > { %p614_p1 = pneg %p613_p13 }
  0x1b   : > { %p621_p5 = pnand %p620_p0, %p614_p1 }
  0x1d   : > { %624 = shalt.err (!%p621_p5)
}
  0x1e   : > { %s684_s7 = smov 128   ;;  %s685_s8 = smov 8  }
  0x1f   : > { %551 = dma.hbm_to_vmem [thread:$0]  (!%p739_p4), %s819_s0, 1024, %s193_s23, [#allocation8], %s684_s7, %s684_s7, %s685_s8  }
  0x20   : > { %p200_p6 = scmp.lt.s32.totalorder %s681_s17, 3  ;;  %p825_p8 = scmp.ge.s32.totalorder %s681_s17, 1 }
  0x22   : > { %p201_p7 = pnand %p825_p8, %p200_p6 }
  0x23   : > { %p558_p9 = scmp.eq.s32.totalorder (!%p201_p7), %s486_s18, 0 }
  0x24   : > { %204 = sbr.rel (%p201_p7) target bundleno = 618 (0x26a), region = 36 }
  0x2b   : > { %664 = dma.done.wait (%p558_p9), [#allocation8], 1024  }
  0x2c   : > { %666 = vsyncadd (%p558_p9), [#allocation8], 4294966272  ;;  %p493_p0 = scmp.ne.s32.totalorder %s673_s15, 0 }
  0x2d   : > { %v251_v0 = vld [vmem:[#allocation7] sm:$0xff] (!%p493_p0)  ;;  %v252_v1 = vld [vmem:[#allocation7 + $0x8] sm:$0xff] (!%p493_p0)  ;;  %v253_v2 = vld [vmem:[#allocation7 + $0x10] sm:$0xff] (!%p493_p0)  ;;  %vm247_vm0 = vcmask (!%p493_p0), 7168   ;;  %v686_v3 = vmov (!%p493_p0), 0.0|0.0   ;;  %v687_v6 = vmov (!%p493_p0), 0.0  }
  0x2e   : > { %242 = sbr.rel (%p493_p0) target bundleno = 455 (0x1c7), region = 44  ;;  %528 = vmatprep.subr.bf16.mxu0 (!%p493_p0), %v686_v3  ;;  %v529_v4 = vpack.c.bf16 (!%p493_p0), %v252_v1, %v251_v0  ;;  %v254_v5 = vld [vmem:[#allocation7 + $0x18] sm:$0xff] (!%p493_p0)  ;;  %248 = vst.msk [vmem:[#allocation3] sm:$0xff] (!%p493_p0), %vm247_vm0, %v687_v6  ;;  %249 = vst.msk [vmem:[#allocation4] sm:$0xff] (!%p493_p0), %vm247_vm0, %v687_v6  ;;  %vm688_vm1 = vmmov (!%p493_p0), 0   ;;  %v255_v8 = vld [vmem:[#allocation7 + $0x20] sm:$0xff] (!%p493_p0) }
  0x2f   : > { %525 = vmatprep.mubr.msk.f32.mxu0 (!%p493_p0), %vm688_vm1, %v687_v6  ;;  %v532_v7 = vpack.c.bf16 (!%p493_p0), %v254_v5, %v253_v2  ;;  %v256_v9 = vld [vmem:[#allocation7 + $0x28] sm:$0xff] (!%p493_p0)  ;;  %v257_v11 = vld [vmem:[#allocation7 + $0x30] sm:$0xff] (!%p493_p0)  ;;  %v258_v12 = vld [vmem:[#allocation7 + $0x38] sm:$0xff] (!%p493_p0)  ;;  %vm259_vm2 = vcmask (!%p493_p0), 523264  }
  0x30   : > { %530 = vmatpush3.bf16.msra.mxu0 (!%p493_p0), %v529_v4  ;;  %v535_v10 = vpack.c.bf16 (!%p493_p0), %v256_v9, %v255_v8  ;;  %v538_v13 = vpack.c.bf16 (!%p493_p0), %v258_v12, %v257_v11  ;;  %v250_v14 = vld [vmem:[%s820_s1] sm:$0xff] (!%p493_p0) }
  0x31   : > { %531 = vmatprep.subr.bf16.mxu0 (!%p493_p0), %v686_v3  ;;  %v358_v31 = vld [vmem:[%s821_s2] sm:$0xff] (!%p493_p0) }
  0x32   : > { %v363_v34 = vld [vmem:[%s822_s3] sm:$0xff] (!%p493_p0) }
  0x34   : > { %533 = vmatpush3.bf16.msra.mxu0 (!%p493_p0), %v532_v7 }
  0x35   : > { %534 = vmatprep.subr.bf16.mxu0 %v686_v3  ;;  %v337_v18 = vld [vmem:[#allocation3] sm:$0xff]  ;;  %v343_v21 = vld [vmem:[#allocation4] sm:$0xff] }
  0x38   : > { %536 = vmatpush3.bf16.msra.mxu0 %v535_v10 }
  0x39   : > { %537 = vmatprep.subr.bf16.mxu0 %v686_v3 }
  0x3c   : > { %539 = vmatpush3.bf16.msra.mxu0 %v538_v13 }
  0x3f   : > { %526 = vmatmul.mubr.msk.f32.vlgmr.msra.gmra.mrb[0].mxu0 %vm259_vm2, %v250_v14 }
 0x112   : > { %v329_v15 = vpop.f32.mrb[0].mxu0 }
 0x113   : > { %336 = vst [vmem:[#allocation2] sm:$0xff] %v329_v15  ;;  %338 = vadd.xlane.f32.xlu0 %v329_v15  ;;  %v527_v16 = vpop.f32.mrb[1].mxu0  ;;  %v344_v17 = vmul.f32 %v329_v15, %v329_v15 }
 0x117   : > { %345 = vadd.xlane.f32.xlu0 %v344_v17 }
 0x1a0   : > { %v339_v19 = vpop.xlane.xlu0 %338 }
 0x1a1   : > { %v340_v20 = vadd.f32 %v339_v19, %v337_v18 }
 0x1a3   : > { %342 = vst.msk [vmem:[#allocation3] sm:$0xff] %vm247_vm0, %v340_v20 }
 0x1a4   : > { %v346_v22 = vpop.xlane.xlu0 %345 }
 0x1a5   : > { %v347_v23 = vadd.f32 %v346_v22, %v343_v21 }
 0x1a7   : > { %348 = vst.msk [vmem:[#allocation4] sm:$0xff] %vm247_vm0, %v347_v23 }
 0x1aa   : > { %v352_v24 = vld [vmem:[#allocation3] sm:$0xff] }
 0x1ab   : > { %v353_v25 = vmul.f32 0.0078125, %v352_v24 }
 0x1ad   : > { %v356_v27 = vmul.f32 %v353_v25, %v353_v25 }
 0x1ae   : > { %v354_v26 = vld [vmem:[#allocation4] sm:$0xff] }
 0x1af   : > { %v355_v28 = vmul.f32 0.0078125, %v354_v26 }
 0x1b1   : > { %v357_v29 = vsub.f32 %v355_v28, %v356_v27 }
 0x1b3   : > { %v359_v30 = vadd.f32 1e-05, %v357_v29 }
 0x1b5   : > { %594 = vrsqrt.f32 %v359_v30 }
 0x1bf   : > { %v595_v32 = vpop.eup %594 }
 0x1c0   : > { %v361_v33 = vmul.f32 %v595_v32, %v358_v31 }
 0x1c2   : > { %362 = vst.msk [vmem:[#allocation5] sm:$0xff] %vm247_vm0, %v361_v33  ;;  %v364_v35 = vmul.f32 %v361_v33, %v353_v25 }
 0x1c4   : > { %v365_v36 = vsub.f32 %v363_v34, %v364_v35 }
 0x1c6   : > { %366 = vst.msk [vmem:[#allocation6] sm:$0xff] %vm247_vm0, %v365_v36 }
 0x1c7 PF: > { %p495_p4 = scmp.ne.s32.totalorder %s673_s15, 1 }
 0x1c8   : > { %v689_v38 = vmov (!%p495_p4), 0   ;;  %v374_v41 = vld [vmem:[#allocation2] sm:$0xff] (!%p495_p4) }
 0x1c9   : > { %370 = sbr.rel (%p495_p4) target bundleno = 595 (0x253), region = 56  ;;  %v375_v37 = vld [vmem:[#allocation5] sm:$0xff] (!%p495_p4)  ;;  %596 = vset.pattern.permute.xlu0 (!%p495_p4), %v689_v38 }
 0x1ca   : > { %378 = vperm.xlu0 (!%p495_p4), %596, %v375_v37  }
 0x1cd   : > { %v382_v39 = vld [vmem:[#allocation6] sm:$0xff] (!%p495_p4) }
 0x1ce   : > { %385 = vperm.xlu0 (!%p495_p4), %596, %v382_v39  }
 0x249   : > { %v379_v40 = vpop.permute.xlu0 %378 }
 0x24a   : > { %v381_v42 = vmul.f32 %v379_v40, %v374_v41 }
 0x24d   : > { %v386_v43 = vpop.permute.xlu0 %385 }
 0x24e   : > { %v388_v44 = vadd.f32 %v386_v43, %v381_v42 }
 0x250   : > { %v389_v45 = vmax.f32 %v388_v44, 0.0 }
 0x252   : > { %390 = vst [vmem:[#allocation10] sm:$0xff] %v389_v45 }
 0x253 PF: > { %p784_p5 = scmp.eq.s32.totalorder %s486_s18, 1  ;;  %s690_s15 = smov [#allocation10]  }
 0x254   : > { %s406_s24 = sshll.u32 %s690_s15, 4  ;;  %s407_s24 = int_to_ptr.vmem [resolvable:$true] %s406_s24 }
 0x255   : > { %s625_s25 = scalar_lea.vmem %s407_s24, 128  ;;  %s631_s26 = scalar_lea.vmem %s407_s24, 256 }
 0x256   : > { %p626_p10 = scmp.ne.s32.totalorder %s407_s24, %s625_s25  ;;  %p632_p13 = scmp.lt.s32.totalorder %s407_s24, %s407_s24 }
 0x257   : > { %p633_p1 = scmp.lt.s32.totalorder %s631_s26, %s625_s25 }
 0x258   : > { %p627_p11 = pnand %p626_p10, %p784_p5 }
 0x259   : > { %p634_p2 = por %p633_p1, %p632_p13 }
 0x25a   : > { %p628_p12 = pneg %p627_p11 }
 0x25c   : > { %p635_p3 = pnand %p634_p2, %p628_p12 }
 0x25e   : > { %638 = shalt.err (!%p635_p3)
}
 0x25f   : > { %s639_s28 = scalar_lea.hbm %s823_s4, 128 }
 0x260   : > { %p640_p6 = scmp.ne.s32.totalorder %s823_s4, %s639_s28  ;;  %p645_p9 = scmp.lt.u32.totalorder %s639_s28, %s823_s4 }
 0x262   : > { %p641_p8 = pnand %p640_p6, %p784_p5 }
 0x264   : > { %p642_p7 = pneg %p641_p8 }
 0x266   : > { %p647_p0 = pnand %p645_p9, %p642_p7 }
 0x268   : > { %650 = shalt.err (!%p647_p0)
}
 0x269   : > { %545 = dma.vmem_to_hbm [thread:$0]  (%p784_p5), %s407_s24, 128, %s823_s4, [#allocation9]  }
 0x26a PF: > { %p561_p4 = scmp.eq.s32.totalorder %s487_s19, 1  ;;  %p827_p10 = scmp.ge.s32.totalorder %s681_s17, 2 }
 0x26c   : > { %p553_p11 = pnand %p561_p4, %p827_p10 }
 0x26e   : > { %668 = dma.done.wait (!%p553_p11), [#allocation9], 128  }
 0x26f   : > { %670 = vsyncadd (!%p553_p11), [#allocation9], 4294967168  ;;  %s20_s17 = sadd.s32 1, %s681_s17   ;;  %s828_s15 = smov %s677_s16 }
 0x270   : > { %p17_p12 = scmp.ge.s32.totalorder %s20_s17, 4   ;;  %s829_s16 = smov %s831_s20 }
 0x272   :  { %19 = sbr.rel (!%p17_p12) target bundleno = 5 (0x5), region = 99 }
 0x279   :  { %424 = vsyncpa [#allocation8], 1 }
 0x27a   :  { %426 = vsyncpa [#allocation8 + $0x1], 1 }
 0x27b   :  { %427 = vsyncpa [#allocation9], 1 }
 0x27c   :  { %429 = vsyncpa [#allocation9 + $0x1], 1 }

</bundles_post_ra>
